<compile_context>
chip_gen: v5e
topology: v5e:2x2
jax: 0.10.0
libtpu: 0.0.40
codegen_flags: <defaults>
</compile_context>

<pallas_src>
import jax
import jax.numpy as jnp
from jax.experimental import pallas as pl
from jax.experimental.pallas import tpu as pltpu


def _round_up(x, m):
    return (x + m - 1) // m * m


def _layout(W, M):
    """Layout of the contiguous halo'd input buffer (lane-aligned main rows).

    [0, base-W)        : left zero pad (covers the single straddle element)
    [base-W, base)     : top halo row
    [base, base+M)     : the TH main rows (base is a multiple of 128)
    [base+M, base+M+W) : bottom halo row
    [base+M+W, L)      : right zero pad (covers the single straddle element)
    """
    base = _round_up(W + 1, 128)
    L = _round_up(base + M + W + 1, 128)
    return base, L


def _vmem_config():
    """(per-tile VMEM budget, vmem_limit_bytes), chosen per TPU generation."""
    cap = 64 * 1024 * 1024                      # conservative default (v7x-sized)
    try:
        cap = pltpu.get_tpu_info().vmem_capacity_bytes
    except Exception:
        pass
    if cap >= 96 * 1024 * 1024:                 # v5e / v6e: 128 MiB per core
        return 20 * 1024 * 1024, 64 * 1024 * 1024
    return 10 * 1024 * 1024, 40 * 1024 * 1024   # v7x: 64 MiB per core


def _tile_bytes(th, W, c_in, c_out):
    m = th * W
    base, L = _layout(W, m)
    return (2 * c_in * L              # xin scratch (bf16)
            + 2 * 9 * c_in * m        # im2col scratch (bf16)
            + 2 * 2 * c_in * m        # double-buffered main input block (bf16)
            + 2 * 4 * c_out * m       # double-buffered output block (f32)
            + 2 * 2 * c_in * 2 * W)   # double-buffered halo block (bf16)


def _choose_tile_h(H, W, c_in, c_out, budget_bytes, n_batch):
    """Largest TH dividing H with TH*W % 128 == 0 (or TH == H) fitting the budget.
    When N == 1, prefer >= 2 spatial tiles so both v7x TensorCores get work."""
    cands = [th for th in range(1, H + 1)
             if H % th == 0 and ((th * W) % 128 == 0 or th == H)]
    fitting = [th for th in sorted(cands, reverse=True)
               if _tile_bytes(th, W, c_in, c_out) <= budget_bytes]
    if not fitting:
        return min(cands)
    if n_batch == 1:
        multi = [th for th in fitting if H // th >= 2]
        if multi:
            return multi[0]
    return fitting[0]


def _make_block_kernel(W, TH, c_in, c_out, base, L):
    M = TH * W
    pad_l = base - W             # left zero-pad length
    pad_r = L - (base + M + W)   # right zero-pad length

    def kernel(x_main_ref, halo_ref, w_ref, shift_ref, o_ref, xin_ref, col_ref):
        # x_main_ref : (1, Cin, TH*W)   bf16  main rows of this tile (auto-pipelined)
        # halo_ref   : (1, 1, Cin, 2W)  bf16  [top halo row | bottom halo row]
        # w_ref      : (Cout, 9*Cin)    bf16  conv weights, BN scale folded, tap-major K
        # shift_ref  : (Cout, 1)        f32   folded BN shift
        # o_ref      : (1, Cout, TH*W)  f32   output tile (lane-dense)
        # xin_ref    : (Cin, L)         bf16  contiguous halo'd rows
        # col_ref    : (9*Cin, TH*W)    bf16  im2col matrix

        # ---- assemble the contiguous halo'd buffer (all sources already in VMEM) --
        xin_ref[:, pl.ds(0, pad_l)] = jnp.zeros((c_in, pad_l), jnp.bfloat16)
        xin_ref[:, pl.ds(base + M + W, pad_r)] = jnp.zeros((c_in, pad_r), jnp.bfloat16)
        halo = halo_ref[0, 0, :, :]
        xin_ref[:, pl.ds(base - W, W)] = halo[:, :W]     # top halo (zeros at t == 0)
        xin_ref[:, pl.ds(base + M, W)] = halo[:, W:]     # bottom halo (zeros at last t)
        xin_ref[:, pl.ds(base, M)] = x_main_ref[0, :, :]

        # ---- im2col:
        #   col[(3*ky+kx)*Cin + c, p] = x[c, row0 + p//W + ky - 1, p%W + kx - 1],
        #   zero outside the image.  Left/right conv padding via lane masks (f32).
        wpos = jax.lax.broadcasted_iota(jnp.int32, (c_in, M), 1) % W
        mask_l = wpos >= 1          # kx == 0 taps need (w-1) >= 0
        mask_r = wpos <= W - 2      # kx == 2 taps need (w+1) <= W-1
        for ky in range(3):
            for kx in range(3):
                off = base - W + ky * W + kx - 1          # static offset
                win = xin_ref[:, pl.ds(off, M)]
                if kx == 0:
                    win = jnp.where(mask_l, win.astype(jnp.float32), 0.0)
                    win = win.astype(jnp.bfloat16)
                elif kx == 2:
                    win = jnp.where(mask_r, win.astype(jnp.float32), 0.0)
                    win = win.astype(jnp.bfloat16)
                col_ref[pl.ds((3 * ky + kx) * c_in, c_in), :] = win

        # ---- one bf16 MXU matmul (K = 9*Cin) + fused BN shift + ReLU, f32 accum ---
        y = jnp.dot(w_ref[...], col_ref[...], preferred_element_type=jnp.float32)
        y = jnp.maximum(y + shift_ref[...], 0.0)
        o_ref[...] = y.reshape(1, c_out, M).astype(o_ref.dtype)

    return kernel


def block_forward(x_nchw, weight_oihw, gamma, beta, running_mean, running_var,
                  eps=1e-5):
    """Forward of Block: Conv2d(3x3, pad=1, no bias) + BatchNorm2d(eval) + ReLU.
    x_nchw: (N, Cin, H, W) -> (N, Cout, H, W) f32."""
    N, c_in, H, W = x_nchw.shape
    c_out = weight_oihw.shape[0]

    budget, vmem_limit = _vmem_config()
    TH = _choose_tile_h(H, W, c_in, c_out, budget, N)
    n_t = H // TH
    M = TH * W
    base, L = _layout(W, M)

    # bf16 activations for the HBM reads and the MXU (accumulation stays f32).
    x_bf = x_nchw.astype(jnp.bfloat16)
    x_flat = x_bf.reshape(N, c_in, H * W)            # free reshape (NCHW contiguous)

    # Halo rows for tile t: image rows t*TH - 1 and (t+1)*TH (zeros at the image
    # boundary).  2 rows per tile -> negligible traffic, and it lets every byte
    # of input flow through auto-pipelined (double-buffered) BlockSpecs.
    x5 = x_bf.reshape(N, c_in, n_t, TH, W)
    zrow = jnp.zeros((N, c_in, 1, W), jnp.bfloat16)
    top = jnp.concatenate([zrow, x5[:, :, :-1, TH - 1, :]], axis=2)   # (N,Cin,n_t,W)
    bot = jnp.concatenate([x5[:, :, 1:, 0, :], zrow], axis=2)         # (N,Cin,n_t,W)
    halos = jnp.transpose(jnp.concatenate([top, bot], axis=-1), (0, 2, 1, 3))
    # halos: (N, n_t, Cin, 2W)

    # Fold eval-mode BN into the weights: out = conv(x, w) * scale + shift.
    scale = gamma / jnp.sqrt(running_var + eps)
    shift = (beta - running_mean * scale).reshape(c_out, 1).astype(jnp.float32)
    # w2[o, (3*ky+kx)*Cin + c] = w[o, c, ky, kx] * scale[o]   (tap-major K layout)
    w2 = weight_oihw * scale[:, None, None, None]
    w2 = jnp.transpose(w2, (0, 2, 3, 1)).reshape(c_out, 9 * c_in).astype(jnp.bfloat16)

    kernel = _make_block_kernel(W, TH, c_in, c_out, base, L)

    out_flat = pl.pallas_call(
        kernel,
        out_shape=jax.ShapeDtypeStruct((N, c_out, H * W), jnp.float32),
        grid_spec=pltpu.PrefetchScalarGridSpec(
            num_scalar_prefetch=0,
            grid=(N, n_t),
            in_specs=[
                pl.BlockSpec((1, c_in, M), lambda n, t: (n, 0, t)),            # main
                pl.BlockSpec((1, 1, c_in, 2 * W), lambda n, t: (n, t, 0, 0)),  # halos
                pl.BlockSpec((c_out, 9 * c_in), lambda n, t: (0, 0)),          # weights
                pl.BlockSpec((c_out, 1), lambda n, t: (0, 0)),                 # BN shift
            ],
            out_specs=pl.BlockSpec((1, c_out, M), lambda n, t: (n, 0, t)),
            scratch_shapes=[
                pltpu.VMEM((c_in, L), jnp.bfloat16),
                pltpu.VMEM((9 * c_in, M), jnp.bfloat16),
            ],
        ),
        compiler_params=pltpu.CompilerParams(
            dimension_semantics=("parallel", "parallel"),
            vmem_limit_bytes=vmem_limit,
        ),
    )(x_flat, halos, w2, shift)

    return out_flat.reshape(N, c_out, H, W)


def _reference_forward(x_nchw, weight_oihw, gamma, beta, running_mean,
                       running_var, eps=1e-5):
    """Pure-JAX reference (f32 lax conv) for correctness checking."""
    y = jax.lax.conv_general_dilated(
        x_nchw, weight_oihw,
        window_strides=(1, 1), padding=((1, 1), (1, 1)),
        dimension_numbers=("NCHW", "OIHW", "NCHW"))
    inv_std = 1.0 / jnp.sqrt(running_var + eps)
    y = (y - running_mean[None, :, None, None]) * inv_std[None, :, None, None]
    y = y * gamma[None, :, None, None] + beta[None, :, None, None]
    return jnp.maximum(y, 0.0)


if __name__ == "__main__":
    # Small deterministic setup: N=2, ch_in=4, ch_out=8, H=W=16
    key = jax.random.PRNGKey(0)
    k_x, k_w, k_g, k_b, k_m, k_v = jax.random.split(key, 6)

    N, ch_in, ch_out, H, W = 2, 4, 8, 16, 16

    x = jax.random.normal(k_x, (N, ch_in, H, W), dtype=jnp.float32)
    weight = jax.random.normal(k_w, (ch_out, ch_in, 3, 3), dtype=jnp.float32) * 0.1
    gamma = 1.0 + 0.1 * jax.random.normal(k_g, (ch_out,), dtype=jnp.float32)
    beta = 0.1 * jax.random.normal(k_b, (ch_out,), dtype=jnp.float32)
    running_mean = 0.1 * jax.random.normal(k_m, (ch_out,), dtype=jnp.float32)
    running_var = jnp.abs(1.0 + 0.1 * jax.random.normal(k_v, (ch_out,),
                                                        dtype=jnp.float32))

    out = block_forward(x, weight, gamma, beta, running_mean, running_var)
    out = jax.block_until_ready(out)

    ref = _reference_forward(x, weight, gamma, beta, running_mean, running_var)
    assert out.shape == (N, ch_out, H, W)
    # bf16 matmul operands -> looser tolerance than an all-f32 pipeline.
    assert jnp.allclose(out, ref, atol=1e-1, rtol=1e-1), "mismatch vs reference"

    print("KERNEL_OK")
</pallas_src>

<mosaic_0001>
module attributes {stable_mosaic.version = 11 : i64} {
  func.func @kernel(%arg0: i32, %arg1: i32, %arg2: memref<1x4x256xbf16, #tpu.memory_space<vmem>>, %arg3: memref<1x1x4x32xbf16, #tpu.memory_space<vmem>>, %arg4: memref<8x36xbf16, #tpu.memory_space<vmem>>, %arg5: memref<8x1xf32, #tpu.memory_space<vmem>>, %arg6: memref<1x8x256xf32, #tpu.memory_space<vmem>>, %arg7: memref<4x512xbf16, #tpu.memory_space<vmem>>, %arg8: memref<36x256xbf16, #tpu.memory_space<vmem>>) attributes {dimension_semantics = [#tpu.dimension_semantics<parallel>, #tpu.dimension_semantics<parallel>], iteration_bounds = array<i64: 2, 1>, scalar_prefetch = 0 : i64, scratch_operands = 2 : i64, tpu.core_type = #tpu.core_type<tc>, window_params = [{transform_indices = @transform_0, window_bounds = array<i64: 1, 4, 256>}, {transform_indices = @transform_1, window_bounds = array<i64: 1, 1, 4, 32>}, {pipeline_mode = #tpu.pipeline_mode<synchronous>, transform_indices = @transform_2, window_bounds = array<i64: 8, 36>}, {pipeline_mode = #tpu.pipeline_mode<synchronous>, transform_indices = @transform_3, window_bounds = array<i64: 8, 1>}, {transform_indices = @transform_4, window_bounds = array<i64: 1, 8, 256>}]} {
    %cst = arith.constant 0.000000e+00 : bf16
    %0 = vector.broadcast %cst : bf16 to vector<4x112xbf16>
    %c0 = arith.constant 0 : index
    %c0_0 = arith.constant 0 : index
    %1 = vector.load %arg7[%c0, %c0_0] : memref<4x512xbf16, #tpu.memory_space<vmem>>, vector<4x112xbf16>
    tpu.vector_store %arg7[%c0, %c0_0], %0 {strides = array<i32>} : memref<4x512xbf16, #tpu.memory_space<vmem>>, vector<4x112xbf16>,
    %cst_1 = arith.constant 0.000000e+00 : bf16
    %2 = vector.broadcast %cst_1 : bf16 to vector<4x112xbf16>
    %c0_2 = arith.constant 0 : index
    %c400 = arith.constant 400 : index
    %3 = vector.load %arg7[%c0_2, %c400] : memref<4x512xbf16, #tpu.memory_space<vmem>>, vector<4x112xbf16>
    tpu.vector_store %arg7[%c0_2, %c400], %2 {strides = array<i32>} : memref<4x512xbf16, #tpu.memory_space<vmem>>, vector<4x112xbf16>,
    %c0_3 = arith.constant 0 : index
    %c0_4 = arith.constant 0 : index
    %c0_5 = arith.constant 0 : index
    %c0_6 = arith.constant 0 : index
    %4 = vector.load %arg3[%c0_3, %c0_4, %c0_5, %c0_6] : memref<1x1x4x32xbf16, #tpu.memory_space<vmem>>, vector<1x1x4x32xbf16>
    %5 = vector.shape_cast %4 : vector<1x1x4x32xbf16> to vector<4x32xbf16>
    %6 = vector.extract_strided_slice %5 {offsets = [0, 0], sizes = [4, 16], strides = [1, 1]} : vector<4x32xbf16> to vector<4x16xbf16>
    %c0_7 = arith.constant 0 : index
    %c112 = arith.constant 112 : index
    %7 = vector.load %arg7[%c0_7, %c112] : memref<4x512xbf16, #tpu.memory_space<vmem>>, vector<4x16xbf16>
    tpu.vector_store %arg7[%c0_7, %c112], %6 {strides = array<i32>} : memref<4x512xbf16, #tpu.memory_space<vmem>>, vector<4x16xbf16>,
    %8 = vector.extract_strided_slice %5 {offsets = [0, 16], sizes = [4, 16], strides = [1, 1]} : vector<4x32xbf16> to vector<4x16xbf16>
    %c0_8 = arith.constant 0 : index
    %c384 = arith.constant 384 : index
    %9 = vector.load %arg7[%c0_8, %c384] : memref<4x512xbf16, #tpu.memory_space<vmem>>, vector<4x16xbf16>
    tpu.vector_store %arg7[%c0_8, %c384], %8 {strides = array<i32>} : memref<4x512xbf16, #tpu.memory_space<vmem>>, vector<4x16xbf16>,
    %c0_9 = arith.constant 0 : index
    %c0_10 = arith.constant 0 : index
    %c0_11 = arith.constant 0 : index
    %10 = vector.load %arg2[%c0_9, %c0_10, %c0_11] : memref<1x4x256xbf16, #tpu.memory_space<vmem>>, vector<1x4x256xbf16>
    %11 = vector.shape_cast %10 : vector<1x4x256xbf16> to vector<4x256xbf16>
    %c0_12 = arith.constant 0 : index
    %c128 = arith.constant 128 : index
    %12 = vector.load %arg7[%c0_12, %c128] : memref<4x512xbf16, #tpu.memory_space<vmem>>, vector<4x256xbf16>
    tpu.vector_store %arg7[%c0_12, %c128], %11 {strides = array<i32>} : memref<4x512xbf16, #tpu.memory_space<vmem>>, vector<4x256xbf16>,
    %13 = tpu.iota {dimensions = array<i32: 1>} : vector<4x256xi32>
    %c16_i32 = arith.constant 16 : i32
    %c0_i32 = arith.constant 0 : i32
    %14 = arith.cmpi eq, %c16_i32, %c0_i32 : i32
    %c1_i32 = arith.constant 1 : i32
    %15 = arith.select %14, %c1_i32, %c16_i32 : i32
    %16 = vector.broadcast %15 : i32 to vector<4x256xi32>
    %17 = arith.remsi %13, %16 : vector<4x256xi32>
    %c0_i32_13 = arith.constant 0 : i32
    %18 = vector.broadcast %c0_i32_13 : i32 to vector<4x256xi32>
    %19 = arith.cmpi ne, %17, %18 : vector<4x256xi32>
    %c0_i32_14 = arith.constant 0 : i32
    %20 = vector.broadcast %c0_i32_14 : i32 to vector<4x256xi32>
    %21 = arith.cmpi slt, %17, %20 : vector<4x256xi32>
    %c0_i32_15 = arith.constant 0 : i32
    %22 = arith.cmpi slt, %15, %c0_i32_15 : i32
    %23 = vector.broadcast %22 : i1 to vector<4x256xi1>
    %24 = vector.broadcast %23 : vector<4x256xi1> to vector<4x256xi1>
    %25 = arith.xori %21, %24 : vector<4x256xi1>
    %26 = arith.andi %25, %19 : vector<4x256xi1>
    %27 = vector.broadcast %15 : i32 to vector<4x256xi32>
    %28 = arith.addi %17, %27 : vector<4x256xi32>
    %29 = arith.select %26, %28, %17 : vector<4x256xi1>, vector<4x256xi32>
    %c1_i32_16 = arith.constant 1 : i32
    %30 = vector.broadcast %c1_i32_16 : i32 to vector<4x256xi32>
    %31 = arith.cmpi sge, %29, %30 : vector<4x256xi32>
    %c14_i32 = arith.constant 14 : i32
    %32 = vector.broadcast %c14_i32 : i32 to vector<4x256xi32>
    %33 = arith.cmpi sle, %29, %32 : vector<4x256xi32>
    %c0_17 = arith.constant 0 : index
    %c111 = arith.constant 111 : index
    %34 = vector.load %arg7[%c0_17, %c111] : memref<4x512xbf16, #tpu.memory_space<vmem>>, vector<4x256xbf16>
    %35 = arith.extf %34 : vector<4x256xbf16> to vector<4x256xf32>
    %cst_18 = arith.constant 0.000000e+00 : f32
    %36 = vector.broadcast %cst_18 : f32 to vector<4x256xf32>
    %37 = arith.select %31, %35, %36 : vector<4x256xi1>, vector<4x256xf32>
    %38 = arith.truncf %37 : vector<4x256xf32> to vector<4x256xbf16>
    %c0_19 = arith.constant 0 : index
    %c0_20 = arith.constant 0 : index
    %39 = vector.load %arg8[%c0_19, %c0_20] : memref<36x256xbf16, #tpu.memory_space<vmem>>, vector<4x256xbf16>
    tpu.vector_store %arg8[%c0_19, %c0_20], %38 {strides = array<i32>} : memref<36x256xbf16, #tpu.memory_space<vmem>>, vector<4x256xbf16>,
    %c0_21 = arith.constant 0 : index
    %c112_22 = arith.constant 112 : index
    %40 = vector.load %arg7[%c0_21, %c112_22] : memref<4x512xbf16, #tpu.memory_space<vmem>>, vector<4x256xbf16>
    %c4 = arith.constant 4 : index
    %c0_23 = arith.constant 0 : index
    %41 = vector.load %arg8[%c4, %c0_23] : memref<36x256xbf16, #tpu.memory_space<vmem>>, vector<4x256xbf16>
    tpu.vector_store %arg8[%c4, %c0_23], %40 {strides = array<i32>} : memref<36x256xbf16, #tpu.memory_space<vmem>>, vector<4x256xbf16>,
    %c0_24 = arith.constant 0 : index
    %c113 = arith.constant 113 : index
    %42 = vector.load %arg7[%c0_24, %c113] : memref<4x512xbf16, #tpu.memory_space<vmem>>, vector<4x256xbf16>
    %43 = arith.extf %42 : vector<4x256xbf16> to vector<4x256xf32>
    %cst_25 = arith.constant 0.000000e+00 : f32
    %44 = vector.broadcast %cst_25 : f32 to vector<4x256xf32>
    %45 = arith.select %33, %43, %44 : vector<4x256xi1>, vector<4x256xf32>
    %46 = arith.truncf %45 : vector<4x256xf32> to vector<4x256xbf16>
    %c8 = arith.constant 8 : index
    %c0_26 = arith.constant 0 : index
    %47 = vector.load %arg8[%c8, %c0_26] : memref<36x256xbf16, #tpu.memory_space<vmem>>, vector<4x256xbf16>
    tpu.vector_store %arg8[%c8, %c0_26], %46 {strides = array<i32>} : memref<36x256xbf16, #tpu.memory_space<vmem>>, vector<4x256xbf16>,
    %c0_27 = arith.constant 0 : index
    %c127 = arith.constant 127 : index
    %48 = vector.load %arg7[%c0_27, %c127] : memref<4x512xbf16, #tpu.memory_space<vmem>>, vector<4x256xbf16>
    %49 = arith.extf %48 : vector<4x256xbf16> to vector<4x256xf32>
    %cst_28 = arith.constant 0.000000e+00 : f32
    %50 = vector.broadcast %cst_28 : f32 to vector<4x256xf32>
    %51 = arith.select %31, %49, %50 : vector<4x256xi1>, vector<4x256xf32>
    %52 = arith.truncf %51 : vector<4x256xf32> to vector<4x256xbf16>
    %c12 = arith.constant 12 : index
    %c0_29 = arith.constant 0 : index
    %53 = vector.load %arg8[%c12, %c0_29] : memref<36x256xbf16, #tpu.memory_space<vmem>>, vector<4x256xbf16>
    tpu.vector_store %arg8[%c12, %c0_29], %52 {strides = array<i32>} : memref<36x256xbf16, #tpu.memory_space<vmem>>, vector<4x256xbf16>,
    %c0_30 = arith.constant 0 : index
    %c128_31 = arith.constant 128 : index
    %54 = vector.load %arg7[%c0_30, %c128_31] : memref<4x512xbf16, #tpu.memory_space<vmem>>, vector<4x256xbf16>
    %c16 = arith.constant 16 : index
    %c0_32 = arith.constant 0 : index
    %55 = vector.load %arg8[%c16, %c0_32] : memref<36x256xbf16, #tpu.memory_space<vmem>>, vector<4x256xbf16>
    tpu.vector_store %arg8[%c16, %c0_32], %54 {strides = array<i32>} : memref<36x256xbf16, #tpu.memory_space<vmem>>, vector<4x256xbf16>,
    %c0_33 = arith.constant 0 : index
    %c129 = arith.constant 129 : index
    %56 = vector.load %arg7[%c0_33, %c129] : memref<4x512xbf16, #tpu.memory_space<vmem>>, vector<4x256xbf16>
    %57 = arith.extf %56 : vector<4x256xbf16> to vector<4x256xf32>
    %cst_34 = arith.constant 0.000000e+00 : f32
    %58 = vector.broadcast %cst_34 : f32 to vector<4x256xf32>
    %59 = arith.select %33, %57, %58 : vector<4x256xi1>, vector<4x256xf32>
    %60 = arith.truncf %59 : vector<4x256xf32> to vector<4x256xbf16>
    %c20 = arith.constant 20 : index
    %c0_35 = arith.constant 0 : index
    %61 = vector.load %arg8[%c20, %c0_35] : memref<36x256xbf16, #tpu.memory_space<vmem>>, vector<4x256xbf16>
    tpu.vector_store %arg8[%c20, %c0_35], %60 {strides = array<i32>} : memref<36x256xbf16, #tpu.memory_space<vmem>>, vector<4x256xbf16>,
    %c0_36 = arith.constant 0 : index
    %c143 = arith.constant 143 : index
    %62 = vector.load %arg7[%c0_36, %c143] : memref<4x512xbf16, #tpu.memory_space<vmem>>, vector<4x256xbf16>
    %63 = arith.extf %62 : vector<4x256xbf16> to vector<4x256xf32>
    %cst_37 = arith.constant 0.000000e+00 : f32
    %64 = vector.broadcast %cst_37 : f32 to vector<4x256xf32>
    %65 = arith.select %31, %63, %64 : vector<4x256xi1>, vector<4x256xf32>
    %66 = arith.truncf %65 : vector<4x256xf32> to vector<4x256xbf16>
    %c24 = arith.constant 24 : index
    %c0_38 = arith.constant 0 : index
    %67 = vector.load %arg8[%c24, %c0_38] : memref<36x256xbf16, #tpu.memory_space<vmem>>, vector<4x256xbf16>
    tpu.vector_store %arg8[%c24, %c0_38], %66 {strides = array<i32>} : memref<36x256xbf16, #tpu.memory_space<vmem>>, vector<4x256xbf16>,
    %c0_39 = arith.constant 0 : index
    %c144 = arith.constant 144 : index
    %68 = vector.load %arg7[%c0_39, %c144] : memref<4x512xbf16, #tpu.memory_space<vmem>>, vector<4x256xbf16>
    %c28 = arith.constant 28 : index
    %c0_40 = arith.constant 0 : index
    %69 = vector.load %arg8[%c28, %c0_40] : memref<36x256xbf16, #tpu.memory_space<vmem>>, vector<4x256xbf16>
    tpu.vector_store %arg8[%c28, %c0_40], %68 {strides = array<i32>} : memref<36x256xbf16, #tpu.memory_space<vmem>>, vector<4x256xbf16>,
    %c0_41 = arith.constant 0 : index
    %c145 = arith.constant 145 : index
    %70 = vector.load %arg7[%c0_41, %c145] : memref<4x512xbf16, #tpu.memory_space<vmem>>, vector<4x256xbf16>
    %71 = arith.extf %70 : vector<4x256xbf16> to vector<4x256xf32>
    %cst_42 = arith.constant 0.000000e+00 : f32
    %72 = vector.broadcast %cst_42 : f32 to vector<4x256xf32>
    %73 = arith.select %33, %71, %72 : vector<4x256xi1>, vector<4x256xf32>
    %74 = arith.truncf %73 : vector<4x256xf32> to vector<4x256xbf16>
    %c32 = arith.constant 32 : index
    %c0_43 = arith.constant 0 : index
    %75 = vector.load %arg8[%c32, %c0_43] : memref<36x256xbf16, #tpu.memory_space<vmem>>, vector<4x256xbf16>
    tpu.vector_store %arg8[%c32, %c0_43], %74 {strides = array<i32>} : memref<36x256xbf16, #tpu.memory_space<vmem>>, vector<4x256xbf16>,
    %c0_44 = arith.constant 0 : index
    %c0_45 = arith.constant 0 : index
    %76 = vector.load %arg4[%c0_44, %c0_45] : memref<8x36xbf16, #tpu.memory_space<vmem>>, vector<8x36xbf16>
    %c0_46 = arith.constant 0 : index
    %c0_47 = arith.constant 0 : index
    %77 = vector.load %arg8[%c0_46, %c0_47] : memref<36x256xbf16, #tpu.memory_space<vmem>>, vector<36x256xbf16>
    %cst_48 = arith.constant dense<0.000000e+00> : vector<8x256xf32>
    %78 = tpu.matmul %76, %77, %cst_48 {dimension_numbers = #tpu.dot_dimension_numbers<[1], [0], [0], [1], [0, 0, 1, 1], [], []>} : vector<8x36xbf16>, vector<36x256xbf16>, vector<8x256xf32> -> vector<8x256xf32>
    %c0_49 = arith.constant 0 : index
    %c0_50 = arith.constant 0 : index
    %79 = vector.load %arg5[%c0_49, %c0_50] : memref<8x1xf32, #tpu.memory_space<vmem>>, vector<8x1xf32>
    %80 = vector.broadcast %79 : vector<8x1xf32> to vector<8x256xf32>
    %81 = arith.addf %78, %80 : vector<8x256xf32>
    %cst_51 = arith.constant 0.000000e+00 : f32
    %82 = vector.broadcast %cst_51 : f32 to vector<8x256xf32>
    %83 = arith.maximumf %81, %82 : vector<8x256xf32>
    %84 = vector.shape_cast %83 : vector<8x256xf32> to vector<1x8x256xf32>
    %c0_52 = arith.constant 0 : index
    %c0_53 = arith.constant 0 : index
    %c0_54 = arith.constant 0 : index
    %85 = vector.load %arg6[%c0_52, %c0_53, %c0_54] : memref<1x8x256xf32, #tpu.memory_space<vmem>>, vector<1x8x256xf32>
    tpu.vector_store %arg6[%c0_52, %c0_53, %c0_54], %84 {strides = array<i32>} : memref<1x8x256xf32, #tpu.memory_space<vmem>>, vector<1x8x256xf32>,
    return
  }
  func.func @transform_0(%arg0: i32, %arg1: i32) -> (i32, i32, i32) {
    %c0_i32 = arith.constant 0 : i32
    %c0_i32_0 = arith.constant 0 : i32
    return %arg0, %c0_i32, %arg1 : i32, i32, i32
  }
  func.func @transform_1(%arg0: i32, %arg1: i32) -> (i32, i32, i32, i32) {
    %c0_i32 = arith.constant 0 : i32
    %c0_i32_0 = arith.constant 0 : i32
    %c0_i32_1 = arith.constant 0 : i32
    return %arg0, %arg1, %c0_i32, %c0_i32_0 : i32, i32, i32, i32
  }
  func.func @transform_2(%arg0: i32, %arg1: i32) -> (i32, i32) {
    %c0_i32 = arith.constant 0 : i32
    %c0_i32_0 = arith.constant 0 : i32
    %c0_i32_1 = arith.constant 0 : i32
    return %c0_i32, %c0_i32_0 : i32, i32
  }
  func.func @transform_3(%arg0: i32, %arg1: i32) -> (i32, i32) {
    %c0_i32 = arith.constant 0 : i32
    %c0_i32_0 = arith.constant 0 : i32
    %c0_i32_1 = arith.constant 0 : i32
    return %c0_i32, %c0_i32_0 : i32, i32
  }
  func.func @transform_4(%arg0: i32, %arg1: i32) -> (i32, i32, i32) {
    %c0_i32 = arith.constant 0 : i32
    %c0_i32_0 = arith.constant 0 : i32
    return %arg0, %c0_i32, %arg1 : i32, i32, i32
  }
}

</mosaic_0001>

<bundles_post_ra>
// kernel: tpu_custom_call.1
= control target key start
LH: loop header
LB: loop body
LE: loop exit
PB: predicated region body
PF: predicated region fallthrough
CT: control target
= control target key end

     0   :  { %9 = vsyncpa [#allocation5], 0  ;;  %s1305_s0 = inlined_call_operand.vmem [shape: bf16[2,4,256], index: 0, kind: input, shape index: {}]   ;;  %s1306_s1 = inlined_call_operand.hbm [shape: bf16[2,1,4,32], index: 1, kind: input, shape index: {}]   ;;  %s1307_s2 = inlined_call_operand.hbm [shape: bf16[8,36], index: 2, kind: input, shape index: {}]   ;;  %s1308_s3 = inlined_call_operand.vmem [shape: f32[8,1], index: 3, kind: input, shape index: {}]   ;;  %s1309_s4 = inlined_call_operand.hbm [shape: f32[2,8,256], index: 4, kind: output, shape index: {}]  }
   0x1   :  { %11 = vsyncpa [#allocation5 + $0x1], 0 }
   0x2   :  { %12 = vsyncpa [#allocation8], 0 }
   0x3   :  { %13 = vsyncpa [#allocation6], 0 }
   0x4   :  { %15 = vsyncpa [#allocation6 + $0x1], 0  ;;  %s1084_s15 = smov 0   ;;  %s1086_s16 = smov 0  }
   0x5   :  { %s1088_s17 = smov 0   ;;  %s1090_s18 = smov 0  }
   0x6   :  { %s1092_s19 = smov 0   ;;  %s1094_s20 = smov 0  }
   0x7 LB: > { %s745_s21 = sadd.s32 4294967295, %s1047_s20   ;;  %s746_s22 = sadd.s32 4294967294, %s1047_s20   ;;  %s1047_s20 = sphi %s1094_s20, %s21_s20   ;;  %s1043_s19 = sphi %s1092_s19, %s1329_s19   ;;  %s1039_s18 = sphi %s1090_s18, %s1328_s18   ;;  %s1035_s17 = sphi %s1088_s17, %s1327_s17   ;;  %s1031_s16 = sphi %s1086_s16, %s1326_s16   ;;  %s1027_s15 = sphi %s1084_s15, %s1325_s15  }
   0x8   : > { %p83_p0 = scmp.ne.s32.totalorder %s1031_s16, %s1027_s15  ;;  %p1118_p1 = scmp.eq.s32.totalorder %s745_s21, 0 }
   0x9   : > { %p1122_p2 = scmp.eq.s32.totalorder %s745_s21, 1  ;;  %p157_p3 = scmp.eq.s32.totalorder %s746_s22, 1 }
   0xa   : > { %p1128_p4 = por %p1118_p1, %p83_p0  ;;  %p747_p5 = scmp.ge.s32.totalorder %s1047_s20, 1 }
   0xb   : > { %p1133_p6 = por %p157_p3, %p83_p0  ;;  %p164_p7 = scmp.lt.s32.totalorder %s1047_s20, 3 }
   0xc   : > { %s176_s29 = sshll.u32 %s1307_s2, 4  ;;  %p749_p9 = scmp.ge.s32.totalorder %s1047_s20, 2  ;;  %s177_s29 = int_to_ptr.hbm [resolvable:$true] %s176_s29 }
   0xd   : > { %p1141_p8 = pnand %p747_p5, %p164_p7  ;;  %s1049_s5 = smov [#allocation7]  }
   0xe   : > { %s178_s6 = sshll.u32 %s1049_s5, 4  ;;  %s33_s7 = sadd.s32 1, %s1043_s19  ;;  %s179_s6 = int_to_ptr.vmem [resolvable:$true] %s178_s6 }
   0xf   : > { %p795_p10 = pneg %p1141_p8  ;;  %p35_p12 = scmp.ge.s32.totalorder %s33_s7, 2 }
  0x10   : > { %s70_s8 = sadd.s32 1, %s1035_s17  ;;  %p77_p13 = scmp.ne.s32.totalorder %s1035_s17, %s1031_s16 }
  0x11   : > { %p796_p11 = pnand %p795_p10, %p1118_p1  ;;  %p78_p0 = scmp.eq.s32.totalorder %s1047_s20, 0 }
  0x12   : > { %s1331_s7 = smov (%p35_p12, %s33_s7), 0  ;;  %p1163_p5 = por %p1122_p2, %p77_p13 }
  0x13   : > { %798 = dma.hbm_to_vmem [thread:$0]  (!%p796_p11), %s177_s29, 64, %s179_s6, [#allocation8]  }
  0x14   : > { %p1157_p3 = por %p78_p0, %p77_p13  ;;  %s65_s11 = ssub.s32 %s1043_s19, %s1331_s7 }
  0x15   : > { %p808_p7 = scmp.lt.s32.totalorder %s1047_s20, 2  ;;  %p68_p10 = scmp.eq.s32.totalorder %s65_s11, 0 }
  0x16   : > { %s205_s12 = sand.u32 1, %s1035_s17   ;;  %s751_s21 = sshll.u32 %s1043_s19, 1 }
  0x17   : > { %s750_s13 = sshll.u32 %s205_s12, 1  ;;  %s214_s28 = scalar_lea.hbm %s1306_s1, %s751_s21 }
  0x18   : > { %s1172_s14 = scalar_select %p68_p10, %s1035_s17, %s70_s8  }
  0x19   : > { %s209_s29 = scalar_lea.vmem [#allocation4], %s750_s13  ;;  %s216_s24 = sshll.u32 %s214_s28, 4  ;;  %s217_s24 = int_to_ptr.hbm [resolvable:$true] %s216_s24 }
  0x1a   : > { %s218_s5 = sshll.u32 %s209_s29, 4  ;;  %p800_p2 = pnand %p808_p7, %p1157_p3  ;;  %s219_s5 = int_to_ptr.vmem [resolvable:$true] %s218_s5 }
  0x1b   : > { %s206_s6 = scalar_lea.sflag [#allocation5], %s205_s12  ;;  %227 = sbr.rel (%p1141_p8) target bundleno = 521 (0x209), region = 36 }
  0x1c   : > { %802 = dma.hbm_to_vmem [thread:$0]  (!%p800_p2), %s217_s24, 32, %s219_s5, %s206_s6  }
  0x1d   : > { %s1183_s8 = sand.u32 (!%p1141_p8), 1, %s1031_s16  }
  0x1e   : > { %s753_s11 = sshll.u32 (!%p1141_p8), %s1183_s8, 1  ;;  %s230_s21 = scalar_lea.sflag (!%p1141_p8), [#allocation5], %s1183_s8 }
  0x1f   : > { %s233_s13 = scalar_lea.vmem (!%p1141_p8), [#allocation4], %s753_s11 }
  0x20   : > { %1014 = dma.done.wait (%p1128_p4), %s230_s21, 32  }
  0x21   : > { %1016 = vsyncadd (%p1128_p4), %s230_s21, 4294967264 }
  0x22   : > { %1018 = dma.done.wait (%p1118_p1), [#allocation8], 64  }
  0x23   : > { %1020 = vsyncadd (%p1118_p1), [#allocation8], 4294967232  ;;  %p274_p8 = scmp.lt.s32.totalorder %s1039_s18, 1  ;;  %vm285_vm0 = vcmask 910336   ;;  %vm287_vm1 = vcmask 1041536   ;;  %v1050_v0 = vmov 0   ;;  %v300_v55 = vlaneseq }
  0x24   : > { %286 = vst.msk [vmem:[#allocation2] sm:$0x3] %vm285_vm0, %v1050_v0  ;;  %899 = vset.pattern.permute.xlu2 %v1050_v0  ;;  %900 = vset.pattern.permute.xlu0 %v1050_v0  ;;  %v289_v1 = vld [vmem:[%s233_s13] sm:$0x3]  ;;  %s1051_s23 = smov 112   ;;  %vm294_vm2 = vcmask 1042304  }
  0x25   : > { %s275_s30 = scalar_select %p274_p8, %s1039_s18, 1  ;;  %288 = vst.msk [vmem:[#allocation2 + $0x6] sm:$0x3] %vm287_vm1, %v1050_v0  ;;  %291 = vrot.lane.b32.xlu0 %v289_v1, %s1051_s23  ;;  %vm296_vm3 = vcmask 123904   ;;  %v301_v56 = vand.u32 127, %v300_v55  ;;  %vm420_vm4 = vcmask 7168  }
  0x26   : > { %s1052_s27 = smov 17   ;;  %s1053_s28 = smov 1   ;;  %vm484_vm7 = vcmask 924672   ;;  %vm455_vm8 = vcmask 1039360   ;;  %vm371_vm11 = vcmask 1043456   ;;  %vm508_vm12 = vcmask 916480  }
  0x27   : > { %s781_s9 = sshll.u32 %s275_s30, 2  ;;  %s1054_s29 = smov 127   ;;  %v302_v58 = vadd.s32 128, %v301_v56  ;;  %v307_v60 = vand.u32 15, %v301_v56  ;;  %vm373_vm13 = vcmask 130048   ;;  %vm529_vm14 = vcmask 908288  }
  0x28   : > { %s281_s22 = scalar_lea.vmem %s1305_s0, %s781_s9  ;;  %s1055_s5 = smov 113   ;;  %vm348_vm15 = vcmask 138240   ;;  %vm394_vm0 = vcmask 121856   ;;  %vm579_vm1 = vcmask 1041408  }
  0x29   : > { %v298_v2 = vld [vmem:[%s281_s22] sm:$0xf]  ;;  %s1056_s24 = smov 111   ;;  %s1057_s6 = smov 16   ;;  %v314_v59 = vand.u32 15, %v302_v58  ;;  %vm1223_vm6 = vcmp.ge.s32.totalorder %v307_v60, 1 }
  0x2a   : > { %299 = vst [vmem:[#allocation2 + $0x2] sm:$0xf] %v298_v2  ;;  %s1058_s11 = smov 15   ;;  %vm1239_vm10 = vcmp.le.s32.totalorder %v307_v60, 14  ;;  %s755_s30 = sshll.u32 %s1183_s8, 4 }
  0x2b   : > { %vm1219_vm5 = vcmp.ge.s32.totalorder %v314_v59, 1  ;;  %vm1235_vm9 = vcmp.le.s32.totalorder %v314_v59, 14  ;;  %s786_s9 = sshll.u32 %s1039_s18, 4  ;;  %s617_s18 = scalar_lea.sflag [#allocation6], %s1183_s8 }
  0x2c   : > { %s630_s22 = scalar_lea.hbm %s1309_s4, %s786_s9 }
  0x31   : > { %v432_v28 = vld [vmem:[#allocation2 + $0x2] sm:$0xf] }
  0x97   : > { %v292_v3 = vpop.permute.xlu0 %291 }
  0x98   : > { %295 = vst.msk [vmem:[#allocation2] sm:$0x3] %vm294_vm2, %v292_v3  ;;  %vm575_vm2 = vcmask 293888  }
  0x99   : > { %297 = vst.msk [vmem:[#allocation2 + $0x6] sm:$0x3] %vm296_vm3, %v292_v3 }
  0x9f   : > { %v331_v4 = vld [vmem:[#allocation2] sm:$0x3f] }
  0xa0   : > { %v332_v5 = vunpack.c.l.bf16 %v331_v4  ;;  %v333_v6 = vunpack.c.h.bf16 %v331_v4  ;;  %v377_v7 = vld [vmem:[#allocation2] sm:$0x3f] }
  0xa1   : > { %v357_v8 = vld [vmem:[#allocation2] sm:$0x3f]  ;;  %v379_v11 = vunpack.c.h.bf16 %v377_v7  ;;  %v378_v15 = vunpack.c.l.bf16 %v377_v7 }
  0xa2   : > { %336 = vst [vmem:[#allocation1] ss:$2 sm:$0xff] %v332_v5  ;;  %v403_v14 = vld [vmem:[#allocation2] sm:$0x3f] }
  0xa3   : > { %338 = vst [vmem:[#allocation1 + $0x10] ss:$2 sm:$0xff] %v333_v6  ;;  %v405_v18 = vunpack.c.h.bf16 %v403_v14  ;;  %v438_v20 = vld [vmem:[#allocation2 + $0x2] sm:$0x3f]  ;;  %v404_v21 = vunpack.c.l.bf16 %v403_v14 }
  0xa4   : > { %v440_v22 = vunpack.c.h.bf16 %v438_v20  ;;  %v467_v27 = vld [vmem:[#allocation2 + $0x2] sm:$0x3f]  ;;  %v439_v35 = vunpack.c.l.bf16 %v438_v20 }
  0xa5   : > { %v469_v29 = vunpack.c.h.bf16 %v467_v27  ;;  %v512_v34 = vld [vmem:[#allocation2 + $0x2] sm:$0x3f]  ;;  %v468_v39 = vunpack.c.l.bf16 %v467_v27 }
  0xa6   : > { %v514_v37 = vunpack.c.h.bf16 %v512_v34  ;;  %v493_v43 = vld [vmem:[#allocation2 + $0x2] sm:$0x3f]  ;;  %v513_v48 = vunpack.c.l.bf16 %v512_v34 }
  0xa9   : > { %v339_v9 = vld.sshfl [vmem:[#allocation1] sm:$0xff pattern:$0x75316420]  ;;  %v340_v10 = vld.sshfl [vmem:[#allocation1 + $0x8] sm:$0xff pattern:$0x75316420] }
  0xaa   : > { %v869_v12 = vpack.i.bf16 %v340_v10, %v339_v9  ;;  %360 = vst [vmem:[#allocation1 + $0x1] ss:$2 sm:$0xff] %v357_v8  ;;  %v1201_v13 = vld.sshfl [vmem:[#allocation1 + $0x10] sm:$0xff pattern:$0x75316420] }
  0xab   : > { %384 = vst [vmem:[#allocation1 + $0x10] ss:$2 sm:$0xff] %v379_v11 }
  0xac   : > { %870 = vrot.lane.b32.xlu2 %v869_v12, %s1052_s27 }
  0xb1   : > { %v1204_v16 = vld.sshfl [vmem:[#allocation1] sm:$0xff pattern:$0x75643120]  ;;  %v1206_v17 = vld.sshfl [vmem:[#allocation1 + $0x8] sm:$0xff pattern:$0x75643120] }
  0xb2   : > { %382 = vst [vmem:[#allocation1] ss:$2 sm:$0xff] %v378_v15  ;;  %v1208_v19 = vld.sshfl [vmem:[#allocation1 + $0x10] sm:$0xff pattern:$0x75316420] }
  0xb3   : > { %410 = vst [vmem:[#allocation1 + $0x10] ss:$2 sm:$0xff] %v405_v18 }
  0xb9   : > { %v385_v23 = vld.sshfl [vmem:[#allocation1] sm:$0xff pattern:$0x75316420]  ;;  %v386_v24 = vld.sshfl [vmem:[#allocation1 + $0x8] sm:$0xff pattern:$0x75316420] }
  0xba   : > { %v413_v25 = vld.sshfl [vmem:[#allocation1 + $0x10] sm:$0xff pattern:$0x75316420]  ;;  %408 = vst [vmem:[#allocation1] ss:$2 sm:$0xff] %v404_v21  ;;  %v894_v26 = vpack.i.bf16 %v386_v24, %v385_v23 }
  0xbb   : > { %418 = vrot.lane.b32.xlu1 %v413_v25, %s1053_s28  ;;  %445 = vst [vmem:[#allocation1 + $0x10] ss:$2 sm:$0xff] %v440_v22  ;;  %v538_v21 = vld [vmem:[#allocation7] sm:$0xf] }
  0xc1   : > { %v411_v30 = vld.sshfl [vmem:[#allocation1] sm:$0xff pattern:$0x75316420]  ;;  %v412_v31 = vld.sshfl [vmem:[#allocation1 + $0x8] sm:$0xff pattern:$0x75316420] }
  0xc2   : > { %v448_v32 = vld.sshfl [vmem:[#allocation1 + $0x10] sm:$0xff pattern:$0x75316420]  ;;  %v874_v33 = vpack.i.bf16 %v412_v31, %v411_v30  ;;  %434 = vst [vmem:[#allocation1] ss:$2 sm:$0xff] %v432_v28 }
  0xc3   : > { %474 = vst [vmem:[#allocation1 + $0x10] ss:$2 sm:$0xff] %v469_v29  ;;  %453 = vrot.lane.b32.xlu2 %v448_v32, %s1054_s29 }
  0xc4   : > { %875 = vrot.lane.b32.xlu0 %v874_v33, %s1053_s28  ;;  %s634_s28 = sshll.u32 %s630_s22, 4  ;;  %s635_s28 = int_to_ptr.hbm [resolvable:$true] %s634_s28 }
  0xc9   : > { %v435_v36 = vld.sshfl [vmem:[#allocation1] sm:$0xff pattern:$0x75643120] }
  0xca   : > { %437 = vst [vmem:[#allocation3 + $0x10] sm:$0x33] %v435_v36  ;;  %v477_v38 = vld.sshfl [vmem:[#allocation1 + $0x10] sm:$0xff pattern:$0x75316420] }
  0xcb   : > { %443 = vst [vmem:[#allocation1] ss:$2 sm:$0xff] %v439_v35 }
  0xcc   : > { %519 = vst [vmem:[#allocation1 + $0x10] ss:$2 sm:$0xff] %v514_v37  ;;  %482 = vrot.lane.b32.xlu0 %v477_v38, %s1055_s5 }
  0xd2   : > { %v446_v40 = vld.sshfl [vmem:[#allocation1] sm:$0xff pattern:$0x75316420]  ;;  %v447_v41 = vld.sshfl [vmem:[#allocation1 + $0x8] sm:$0xff pattern:$0x75316420] }
  0xd3   : > { %v522_v42 = vld.sshfl [vmem:[#allocation1 + $0x10] sm:$0xff pattern:$0x75316420]  ;;  %472 = vst [vmem:[#allocation1] ss:$2 sm:$0xff] %v468_v39  ;;  %v879_v44 = vpack.i.bf16 %v447_v41, %v446_v40 }
  0xd4   : > { %527 = vrot.lane.b32.xlu1 %v522_v42, %s1056_s24 }
  0xda   : > { %v475_v45 = vld.sshfl [vmem:[#allocation1] sm:$0xff pattern:$0x75316420]  ;;  %v476_v46 = vld.sshfl [vmem:[#allocation1 + $0x8] sm:$0xff pattern:$0x75316420] }
  0xdb   : > { %v884_v47 = vpack.i.bf16 %v476_v46, %v475_v45  ;;  %496 = vst [vmem:[#allocation1 + $0x1] ss:$2 sm:$0xff] %v493_v43 }
  0xdc   : > { %880 = vrot.lane.b32.xlu1 %v879_v44, %s1054_s29  ;;  %s975_s29 = sshra.s32 %s635_s28, 4  ;;  %s976_s29 = int_to_ptr.hbm [resolvable:$true] %s975_s29 }
  0xdd   : > { %885 = vrot.lane.b32.xlu2 %v884_v47, %s1055_s5  ;;  %s977_s5 = scalar_lea.hbm %s976_s29, 16  ;;  %p982_p12 = scmp.lt.s32.totalorder %s976_s29, %s1309_s4 }
  0xde   : > { %p978_p1 = scmp.ne.s32.totalorder %s976_s29, %s977_s5 }
  0xe0   : > { %p979_p4 = pnand %p978_p1, %p1163_p5 }
  0xe2   : > { %v497_v49 = vld.sshfl [vmem:[#allocation1] sm:$0xff pattern:$0x75643120]  ;;  %v499_v50 = vld.sshfl [vmem:[#allocation1 + $0x8] sm:$0xff pattern:$0x75643120]  ;;  %p980_p11 = pneg %p979_p4 }
  0xe3   : > { %517 = vst [vmem:[#allocation1] ss:$2 sm:$0xff] %v513_v48 }
  0xe4   : > { %501 = vrot.lane.b32.xlu1 %v497_v49, %s1051_s23 }
  0xe5   : > { %503 = vrot.lane.b32.xlu2 %v499_v50, %s1051_s23  ;;  %s272_s23 = scalar_lea.vmem [#allocation9], %s755_s30 }
  0xea   : > { %v520_v51 = vld.sshfl [vmem:[#allocation1] sm:$0xff pattern:$0x75316420]  ;;  %v521_v52 = vld.sshfl [vmem:[#allocation1 + $0x8] sm:$0xff pattern:$0x75316420] }
  0xeb   : > { %v889_v53 = vpack.i.bf16 %v521_v52, %v520_v51  ;;  %v544_v51 = vld [vmem:[%s1308_s3] sm:$0xff] }
  0xec   : > { %365 = vrot.lane.b32.xlu1 %v1204_v16, %s1057_s6 }
  0xed   : > { %367 = vrot.lane.b32.xlu2 %v1206_v17, %s1057_s6  ;;  %890 = vrot.lane.b32.xlu0 %v889_v53, %s1056_s24 }
  0xf4   : > { %392 = vrot.lane.b32.xlu1 %v1208_v19, %s1058_s11 }
  0xf5   : > { %346 = vrot.lane.b32.xlu0 %v1201_v13, %s1052_s27  ;;  %547 = vperm.xlu2 %899, %v544_v51   ;;  %s632_s27 = sshll.u32 %s272_s23, 4  ;;  %s633_s27 = int_to_ptr.vmem [resolvable:$true] %s632_s27 }
  0xfd   : > { %895 = vrot.lane.b32.xlu0 %v894_v26, %s1058_s11  ;;  %s981_s11 = scalar_lea.hbm %s1309_s4, 32 }
  0xfe   : > { %p983_p13 = scmp.lt.s32.totalorder %s981_s11, %s977_s5 }
 0x100   : > { %p984_p0 = por %p983_p13, %p982_p12 }
 0x102   : > { %p985_p3 = pnand %p984_p0, %p980_p11 }
 0x106   : > { %v1217_v54 = vpop.permute.xlu2 %870 }
 0x107   : > { %v873_v43 = vunpack.i.h.bf16 %v1217_v54  ;;  %v872_v45 = vunpack.i.l.bf16 %v1217_v54 }
 0x109   : > { %v349_v53 = vsel %vm348_vm15, %v872_v45, %v873_v43 }
 0x10a   : > { %v353_v56 = vsel %vm1223_vm6, %v349_v53, 0.0 }
 0x11d   : > { %v454_v57 = vpop.permute.xlu2 %453 }
 0x12d   : > { %v419_v2 = vpop.permute.xlu1 %418 }
 0x136   : > { %v876_v61 = vpop.permute.xlu0 %875 }
 0x137   : > { %v878_v62 = vunpack.i.h.bf16 %v876_v61  ;;  %v877_v63 = vunpack.i.l.bf16 %v876_v61  ;;  %v886_v0 = vpop.permute.xlu2 %885 }
 0x138   : > { %v888_v6 = vunpack.i.h.bf16 %v886_v0  ;;  %v887_v7 = vunpack.i.l.bf16 %v886_v0 }
 0x139   : > { %v422_v4 = vsel %vm420_vm4, %v878_v62, %v419_v2  ;;  %v421_v5 = vsel %vm420_vm4, %v877_v63, %v878_v62 }
 0x13a   : > { %v425_v8 = vsel %vm1223_vm6, %v421_v5, 0.0  ;;  %v426_v9 = vsel %vm1219_vm5, %v422_v4, 0.0  ;;  %v485_v12 = vsel %vm484_vm7, %v887_v7, %v888_v6 }
 0x13b   : > { %v427_v10 = vpack.c.bf16 %v426_v9, %v425_v8  ;;  %v489_v15 = vsel %vm1223_vm6, %v485_v12, 0.0 }
 0x13d   : > { %v429_v11 = vrot.slane %v427_v10, 6 }
 0x13e   : > { %v483_v13 = vpop.permute.xlu0 %482 }
 0x13f   : > { %431 = vst [vmem:[#allocation3 + $0x8] sm:$0xcc] %v429_v11  ;;  %v486_v14 = vsel %vm484_vm7, %v888_v6, %v483_v13  ;;  %v504_v26 = vpop.permute.xlu2 %503 }
 0x140   : > { %v490_v16 = vsel %vm1219_vm5, %v486_v14, 0.0  ;;  %v506_v32 = vrot.slane %v504_v26, 4 }
 0x141   : > { %v491_v17 = vpack.c.bf16 %v490_v16, %v489_v15 }
 0x143   : > { %492 = vst [vmem:[#allocation3 + $0x18] sm:$0x33] %v491_v17 }
 0x146   : > { %v528_v18 = vpop.permute.xlu1 %527 }
 0x147   : > { %v368_v36 = vpop.permute.xlu2 %367 }
 0x148   : > { %v370_v38 = vrot.slane %v368_v36, 4 }
 0x14e   : > { %v881_v19 = vpop.permute.xlu1 %880 }
 0x14f   : > { %v883_v22 = vunpack.i.h.bf16 %v881_v19  ;;  %v882_v23 = vunpack.i.l.bf16 %v881_v19 }
 0x151   : > { %v457_v24 = vsel %vm455_vm8, %v883_v22, %v454_v57  ;;  %v456_v25 = vsel %vm455_vm8, %v882_v23, %v883_v22 }
 0x152   : > { %v461_v27 = vsel %vm1235_vm9, %v457_v24, 0.0  ;;  %v460_v28 = vsel %vm1239_vm10, %v456_v25, 0.0  ;;  %v548_v24 = vpop.permute.xlu2 %547 }
 0x153   : > { %v462_v29 = vpack.c.bf16 %v461_v27, %v460_v28 }
 0x155   : > { %v464_v30 = vrot.slane %v462_v29, 6 }
 0x156   : > { %v502_v31 = vpop.permute.xlu1 %501 }
 0x157   : > { %466 = vst [vmem:[#allocation3 + $0x10] sm:$0xcc] %v464_v30  ;;  %v505_v33 = vrot.slane %v502_v31, 4 }
 0x159   : > { %v507_v34 = vsel %vm371_vm11, %v505_v33, %v506_v32 }
 0x15a   : > { %v509_v35 = vsel %vm508_vm12, %v502_v31, %v507_v34 }
 0x15b   : > { %511 = vst [vmem:[#allocation3 + $0x18] sm:$0xcc] %v509_v35 }
 0x15e   : > { %v366_v37 = vpop.permute.xlu1 %365  ;;  %v768_v13 = vld [vmem:[#allocation3 + $0x10] sm:$0xf]  ;;  %v784_v14 = vld [vmem:[#allocation3 + $0x14] sm:$0xf] }
 0x15f   : > { %v369_v39 = vrot.slane %v366_v37, 4  ;;  %v891_v40 = vpop.permute.xlu0 %890 }
 0x160   : > { %v893_v41 = vunpack.i.h.bf16 %v891_v40  ;;  %v892_v42 = vunpack.i.l.bf16 %v891_v40 }
 0x161   : > { %v372_v44 = vsel %vm371_vm11, %v369_v39, %v370_v38 }
 0x162   : > { %v374_v46 = vsel %vm373_vm13, %v366_v37, %v372_v44  ;;  %v531_v47 = vsel %vm529_vm14, %v893_v41, %v528_v18  ;;  %v530_v48 = vsel %vm529_vm14, %v892_v42, %v893_v41  ;;  %v785_v9 = vld [vmem:[#allocation3 + $0x14] sm:$0xf0]  ;;  %v770_v1 = vld [vmem:[#allocation3 + $0x18] sm:$0xf0] }
 0x163   : > { %376 = vst [vmem:[#allocation3] sm:$0xcc] %v374_v46  ;;  %v535_v49 = vsel %vm1235_vm9, %v531_v47, 0.0  ;;  %v534_v50 = vsel %vm1239_vm10, %v530_v48, 0.0  ;;  %v769_v15 = vor.u32 %v785_v9, %v768_v13  ;;  %v773_v16 = vor.u32 %v784_v14, %v770_v1 }
 0x164   : > { %v536_v52 = vpack.c.bf16 %v535_v49, %v534_v50 }
 0x166   : > { %537 = vst [vmem:[#allocation3 + $0x20] sm:$0x33] %v536_v52  ;;  %v393_v5 = vpop.permute.xlu1 %392 }
 0x167   : > { %v347_v54 = vpop.permute.xlu0 %346 }
 0x168   : > { %v350_v55 = vsel %vm348_vm15, %v873_v43, %v347_v54 }
 0x169   : > { %v354_v57 = vsel %vm1219_vm5, %v350_v55, 0.0 }
 0x16a   : > { %v355_v58 = vpack.c.bf16 %v354_v57, %v353_v56 }
 0x16c   : > { %356 = vst [vmem:[#allocation3] sm:$0x33] %v355_v58 }
 0x16d   : > { %v543_v59 = vld [vmem:[#allocation3 + $0x20] sm:$0x33] }
 0x16e   : > { %v563_v60 = vunpack.c.l.b16 %v543_v59  ;;  %v564_v61 = vunpack.c.h.b16 %v543_v59 }
 0x16f   : > { %v896_v62 = vpop.permute.xlu0 %895 }
 0x170   : > { %v898_v63 = vunpack.i.h.bf16 %v896_v62  ;;  %v897_v0 = vunpack.i.l.bf16 %v896_v62  ;;  %v569_v2 = vpack.c.b16 %v563_v60, %v563_v60  ;;  %v570_v4 = vpack.c.b16 %v564_v61, %v564_v61 }
 0x172   : > { %v396_v6 = vsel %vm394_vm0, %v898_v63, %v393_v5  ;;  %v395_v7 = vsel %vm394_vm0, %v897_v0, %v898_v63  ;;  %v581_v3 = vsel %vm579_vm1, %v569_v2, 0  ;;  %v584_v8 = vsel %vm579_vm1, %v570_v4, 0 }
 0x173   : > { %v400_v10 = vsel %vm1235_vm9, %v396_v6, 0.0  ;;  %v399_v11 = vsel %vm1239_vm10, %v395_v7, 0.0  ;;  %591 = vmatpush.bf16.msra.mxu0 %v581_v3  ;;  %604 = vmatpush.bf16.msra.mxu1 %v584_v8  ;;  %v760_v17 = vld [vmem:[#allocation3] sm:$0xf]  ;;  %v782_v19 = vld [vmem:[#allocation3 + $0x4] sm:$0xf] }
 0x174   : > { %v401_v12 = vpack.c.bf16 %v400_v10, %v399_v11 }
 0x176   : > { %402 = vst [vmem:[#allocation3 + $0x8] sm:$0x33] %v401_v12 }
 0x177   : > { %592 = vmatpush.bf16.msra.mxu0 %v769_v15  ;;  %605 = vmatpush.bf16.msra.mxu1 %v773_v16 }
 0x17d   : > { %v783_v18 = vld [vmem:[#allocation3 + $0x4] sm:$0xf0]  ;;  %v762_v20 = vld [vmem:[#allocation3 + $0x8] sm:$0xf0] }
 0x17e   : > { %v761_v22 = vor.u32 %v783_v18, %v760_v17  ;;  %v765_v23 = vor.u32 %v782_v19, %v762_v20 }
 0x180   : > { %593 = vmatpush.bf16.msra.mxu0 %v761_v22  ;;  %606 = vmatpush.bf16.msra.mxu1 %v765_v23 }
 0x183   : > { %774 = vmatmul.msk.bf16.vlgmr.msra.gmra.mxu0 %vm575_vm2, %v538_v21  ;;  %775 = vmatmul.msk.bf16.vlgmr.msra.gmra.mxu1 %vm575_vm2, %v538_v21 }
 0x200   : > { %v595_v25 = vpop.f32.mrf.mxu0  ;;  %v608_v26 = vpop.f32.mrf.mxu1 }
 0x201   : > { %v596_v27 = vadd.f32 %v595_v25, %v548_v24  ;;  %v609_v28 = vadd.f32 %v608_v26, %v548_v24 }
 0x203   : > { %v612_v29 = vmax.f32 %v596_v27, 0.0  ;;  %v613_v30 = vmax.f32 %v609_v28, 0.0 }
 0x205   : > { %614 = vst [vmem:[%s272_s23] sm:$0xff] %v612_v29 }
 0x206   : > { %615 = vst [vmem:[%s272_s23 + $0x8] sm:$0xff] %v613_v30 }
 0x207   : > { %988 = shalt.err (!%p985_p3)
}
 0x208   : > { %793 = dma.vmem_to_hbm [thread:$0]  (%p1163_p5), %s633_s27, 256, %s635_s28, %s617_s18   ;;  %v597_v31 = vpop.f32.mrf.mxu0  ;;  %v610_v32 = vpop.f32.mrf.mxu1 }
 0x209 PF: > { %s646_s8 = sand.u32 1, %s1027_s15   ;;  %p804_p7 = pnand %p749_p9, %p1133_p6 }
 0x20a   : > { %s647_s30 = scalar_lea.sflag [#allocation6], %s646_s8 }
 0x20b   : > { %p805_p10 = pneg %p804_p7 }
 0x20d   : > { %1022 = dma.done.wait (%p805_p10), %s647_s30, 256  }
 0x20e   : > { %1024 = vsyncadd (%p805_p10), %s647_s30, 4294967040  ;;  %s21_s20 = sadd.s32 1, %s1047_s20   ;;  %s1325_s15 = smov %s1031_s16 }
 0x20f   : > { %p18_p2 = scmp.ge.s32.totalorder %s21_s20, 4   ;;  %s1326_s16 = smov %s1035_s17 }
 0x210   : > { %s1327_s17 = smov %s1172_s14  ;;  %s1328_s18 = smov %s1043_s19 }
 0x211   : > { %s1329_s19 = smov %s1331_s7  ;;  %20 = sbr.rel (!%p18_p2) target bundleno = 7 (0x7), region = 96 }
 0x216   :  { %653 = vsyncpa [#allocation5], 1 }
 0x217   :  { %655 = vsyncpa [#allocation5 + $0x1], 1 }
 0x218   :  { %656 = vsyncpa [#allocation8], 1 }
 0x219   :  { %657 = vsyncpa [#allocation6], 1 }
 0x21a   :  { %659 = vsyncpa [#allocation6 + $0x1], 1 }

</bundles_post_ra>
